<compile_context>
chip_gen: v6e
topology: v6e:2x2x1
jax: 0.10.0
libtpu: 0.0.40
codegen_flags: <defaults>
</compile_context>

<pallas_src>
import math

import jax
import jax.numpy as jnp
from jax import lax
from jax.experimental import pallas as pl
from jax.experimental.pallas import tpu as pltpu


_INV_SQRT2 = 1.0 / math.sqrt(2.0)


def _round_up(x, m):
    return (x + m - 1) // m * m


def _gelu_exact(h):
    # torch.nn.GELU() default: 0.5 * x * (1 + erf(x / sqrt(2))), kept in f32.
    return 0.5 * h * (1.0 + lax.erf(h * _INV_SQRT2))


# ----------------------------- kernels --------------------------------------


def _make_resident_kernel(hid, sub):
    """Full w1/w2 resident in VMEM (num_hid == 1). The hidden dim is processed
    in `sub`-wide static sub-chunks so the (tm, sub) f32 intermediate stays
    small; weight slices are 128-aligned static slices of the resident block."""
    num_sub = hid // sub

    def kernel(x_ref, w1_ref, b1_ref, w2_ref, b2_ref, o_ref):
        x = x_ref[...]
        acc = jnp.zeros((x.shape[0], o_ref.shape[-1]), jnp.float32)
        for s in range(num_sub):  # static, unrolled
            lo = s * sub
            h = jnp.dot(x, w1_ref[:, lo:lo + sub],
                        preferred_element_type=jnp.float32)
            h = _gelu_exact(h + b1_ref[:, lo:lo + sub])
            # drop1 is identity (p = 0.0)
            acc = acc + jnp.dot(h.astype(w2_ref.dtype), w2_ref[lo:lo + sub, :],
                                preferred_element_type=jnp.float32)
        # drop2 is identity (p = 0.0)
        o_ref[...] = (acc + b2_ref[...]).astype(o_ref.dtype)

    return kernel


def _chunked_kernel_accum_out(x_ref, w1_ref, b1_ref, w2_ref, b2_ref, o_ref):
    """Hidden-chunked path, f32 output: o_ref's block index is constant across
    the k axis, so it is VMEM-resident — accumulate into it directly."""
    k = pl.program_id(1)

    @pl.when(k == 0)
    def _():
        o_ref[...] = jnp.zeros_like(o_ref) + b2_ref[...]

    h = jnp.dot(x_ref[...], w1_ref[...], preferred_element_type=jnp.float32)
    h = _gelu_exact(h + b1_ref[...])
    # drop1 / drop2 are identity (p = 0.0)
    o_ref[...] += jnp.dot(h.astype(w2_ref.dtype), w2_ref[...],
                          preferred_element_type=jnp.float32)


def _chunked_kernel_scratch(x_ref, w1_ref, b1_ref, w2_ref, b2_ref, o_ref,
                            acc_ref):
    """Hidden-chunked path, non-f32 output: f32 scratch accumulator."""
    k = pl.program_id(1)

    @pl.when(k == 0)
    def _():
        acc_ref[...] = jnp.zeros_like(acc_ref)

    h = jnp.dot(x_ref[...], w1_ref[...], preferred_element_type=jnp.float32)
    h = _gelu_exact(h + b1_ref[...])
    acc_ref[...] += jnp.dot(h.astype(w2_ref.dtype), w2_ref[...],
                            preferred_element_type=jnp.float32)

    @pl.when(k == pl.num_programs(1) - 1)
    def _():
        o_ref[...] = (acc_ref[...] + b2_ref[...]).astype(o_ref.dtype)


# --------------------------- wrapper helpers ---------------------------------


def _chip_profile():
    """(device_kind, physical VMEM bytes); guarded so it never hard-fails."""
    kind = ""
    try:
        kind = jax.devices()[0].device_kind.lower()
    except Exception:
        pass
    vmem_cap = None
    try:
        info = pltpu.get_tpu_info()
        for attr in ("vmem_capacity_bytes", "vmem_bytes", "vmem_size_bytes"):
            val = getattr(info, attr, None)
            if val:
                vmem_cap = int(val)
                break
    except Exception:
        pass
    if vmem_cap is None:
        vmem_cap = (64 << 20) if "7" in kind else (128 << 20)
    return kind, vmem_cap


def _pick_hidden_block(in_f, hid, out_f, w_itemsize, resident_budget,
                       chunk_budget):
    """Full hid if single-buffered weights fit the resident budget, else the
    largest 256- (fallback 128-) aligned divisor of hid whose double-buffered
    chunks fit the chunk budget (capped at 2048)."""
    full_single = (in_f + out_f) * hid * w_itemsize
    if full_single <= resident_budget:
        return hid
    align = 256 if hid % 256 == 0 else (128 if hid % 128 == 0 else 0)
    if align == 0:
        raise ValueError(
            f"fc1/fc2 weights need {full_single} bytes of VMEM "
            f"(> budget {resident_budget}) but hidden_features={hid} is not a "
            "multiple of 128, so the hidden dim cannot be chunked cleanly; "
            "pass hidden_block= explicitly.")
    per_col = 2 * (in_f + out_f) * w_itemsize  # double-buffered bytes / hidden col
    th = max(align, (chunk_budget // per_col) // align * align)
    th = min(th, hid, 2048)                    # 2048 bounds the (tm, th) f32 temp
    th = max(align, th // align * align)
    while th > align and hid % th != 0:
        th -= align
    return th


def _pick_sub_hidden(hid, tm_eff, max_bytes=8 << 20):
    """Sub-chunk width for the resident-weights kernel so the (tm, sub) f32
    GELU intermediate stays within ~max_bytes (avoids compiler spills)."""
    if tm_eff * hid * 4 <= max_bytes or hid % 128 != 0:
        return hid
    sub = max(128, (max_bytes // (4 * tm_eff)) // 128 * 128)
    sub = min(sub, hid)
    while sub > 128 and hid % sub != 0:
        sub -= 128
    return sub if hid % sub == 0 else hid


def _weight_pipeline_mode(buffer_count):
    """pl.Buffered(n) if this jax build supports BlockSpec(pipeline_mode=...)."""
    if buffer_count is None or not hasattr(pl, "Buffered"):
        return None
    try:
        mode = pl.Buffered(buffer_count)
        pl.BlockSpec((8, 128), lambda i, k: (0, 0), pipeline_mode=mode)
    except (TypeError, ValueError):
        return None
    return mode


# ------------------------------- wrapper --------------------------------------


def mlp_pallas(x, w1, b1, w2, b2, *, tm=None, hidden_block=None,
               compute_dtype=None, weight_vmem_budget=None,
               weight_buffers=None):
    """Fused MLP: y = gelu(x @ w1 + b1) @ w2 + b2   (dropout p=0 omitted).

    x : (N, in_features)
    w1: (in_features, hidden)    b1: (hidden,)
    w2: (hidden, out_features)   b2: (out_features,)

    tm            : token tile; None -> per-chip auto (larger when weights are
                    chunked so re-streamed weight bytes are amortized).
    hidden_block  : hidden-dim chunk; None -> auto (full hidden kept resident
                    whenever it fits the per-chip weight VMEM budget).
    compute_dtype : e.g. jnp.bfloat16 for bf16 MXU inputs with f32 accumulation.
    weight_buffers: override pl.Buffered(n) depth on chunked weight specs
                    (sweep 3 if profiling shows exposed weight DMA).
    """
    n, in_f = x.shape
    hid = w1.shape[1]
    out_f = w2.shape[1]
    out_dtype = x.dtype
    out_is_f32 = jnp.dtype(out_dtype) == jnp.dtype(jnp.float32)

    if compute_dtype is not None:
        x = x.astype(compute_dtype)
        w1 = w1.astype(compute_dtype)
        w2 = w2.astype(compute_dtype)
    x_itemsize = jnp.dtype(x.dtype).itemsize
    w_itemsize = jnp.dtype(w1.dtype).itemsize
    out_itemsize = jnp.dtype(out_dtype).itemsize

    # Biases stay f32; they are added to the f32 accumulator.
    b1_2d = b1.astype(jnp.float32).reshape(1, hid)
    b2_2d = b2.astype(jnp.float32).reshape(1, out_f)

    # ---- per-chip budgets (v5e/v6e: 128 MiB physical VMEM, v7x: 64 MiB) -----
    kind, vmem_cap = _chip_profile()
    big_vmem = vmem_cap >= (96 << 20)
    if big_vmem:
        vmem_limit_cap = 112 << 20
        resident_budget = weight_vmem_budget or (88 << 20)
        chunk_budget = 16 << 20
    else:  # v7x: keep total <= ~56 MiB of the 64 MiB physical
        vmem_limit_cap = 56 << 20
        resident_budget = weight_vmem_budget or (36 << 20)
        chunk_budget = 12 << 20
    chunk_budget = min(chunk_budget, resident_budget)

    # ---- hidden chunking decision -------------------------------------------
    if hidden_block is not None:
        if hid % hidden_block != 0:
            raise ValueError("hidden_block must divide hidden_features")
        th = hidden_block
    else:
        th = _pick_hidden_block(in_f, hid, out_f, w_itemsize,
                                resident_budget, chunk_budget)
    num_hid = hid // th
    chunked = num_hid > 1

    # ---- token tile -----------------------------------------------------------
    # Sublane packing for the activation dtype: f32 -> 8, bf16 -> 16, i8 -> 32.
    pack = {4: 8, 2: 16, 1: 32}.get(x_itemsize, 8)
    if tm is None:
        if chunked:
            # Weight-streaming roofline: flops per weight byte per k-step is
            # 2*tm/itemsize -> tm ~768 on v6e, ~512 on v5e/v7x (bf16), 2x for f32.
            base = 768 if (big_vmem and "v5" not in kind) else 512
            if w_itemsize == 4:
                base = min(2 * base, 1024)
            tm = base
        else:
            tm = 512
    # Tiny-n corner: the sublane dim of a block must still be a packing multiple.
    n_eff = n
    if n < pack:
        x = jnp.pad(x, ((0, pack - n), (0, 0)))
        n_eff = pack
    tm_eff = _round_up(min(tm, _round_up(n_eff, pack)), pack)
    # Megacore (v7x: 2 TCs share the "parallel" axis): keep >= 2 token tiles.
    if pl.cdiv(n_eff, tm_eff) < 2:
        half = _round_up(pl.cdiv(n_eff, 2), pack)
        if half < tm_eff and pl.cdiv(n_eff, half) >= 2:
            tm_eff = half

    # ---- weight pipeline mode --------------------------------------------------
    if chunked:
        pipe_mode = _weight_pipeline_mode(weight_buffers)  # None -> default (2)
        wbuf = weight_buffers if pipe_mode is not None else 2
    else:
        pipe_mode = _weight_pipeline_mode(1)  # grid-invariant -> single buffer
        wbuf = 1 if pipe_mode is not None else 2
    use_scratch = chunked and not out_is_f32

    # ---- VMEM footprint -> clamp tm, explicit vmem limit (no fudge factor) ----
    headroom = 4 << 20

    def footprint(tm_, hidden_width):
        return (2 * tm_ * in_f * x_itemsize                # x tile (double-buffered)
                + 2 * tm_ * out_f * out_itemsize           # out tile (double-buffered)
                + wbuf * (in_f + out_f) * th * w_itemsize  # w1/w2 blocks
                + 2 * 2 * (th + out_f) * 4                 # biases (double-buffered)
                + (tm_ * out_f * 4 if use_scratch else 0)  # f32 accumulator scratch
                + tm_ * hidden_width * 4)                  # fc1/GELU f32 intermediate

    while True:
        sub = th if chunked else _pick_sub_hidden(hid, tm_eff)
        need = footprint(tm_eff, sub)
        if need + headroom <= vmem_limit_cap or tm_eff <= pack:
            break
        tm_eff = max(pack, _round_up(tm_eff // 2, pack))
    vmem_limit = int(min(vmem_limit_cap, max(need + headroom, 16 << 20)))

    n_tiles = pl.cdiv(n_eff, tm_eff)
    grid = (n_tiles, num_hid)

    # ---- kernel / scratch selection --------------------------------------------
    if not chunked:
        kernel = _make_resident_kernel(hid, sub)
        scratch_shapes = ()
    elif out_is_f32:
        kernel = _chunked_kernel_accum_out
        scratch_shapes = ()
    else:
        kernel = _chunked_kernel_scratch
        scratch_shapes = (pltpu.VMEM((tm_eff, out_f), jnp.float32),)

    cost = pl.CostEstimate(
        flops=2 * n_eff * hid * (in_f + out_f),
        transcendentals=n_eff * hid,
        bytes_accessed=int(
            n_eff * in_f * x_itemsize
            + (n_tiles if chunked else 1) * (in_f + out_f) * hid * w_itemsize
            + n_eff * out_f * out_itemsize))

    def build(mode):
        def wspec(shape, index_map):
            if mode is None:
                return pl.BlockSpec(shape, index_map)
            return pl.BlockSpec(shape, index_map, pipeline_mode=mode)

        in_specs = [
            pl.BlockSpec((tm_eff, in_f), lambda i, k: (i, 0)),  # x tile
            wspec((in_f, th), lambda i, k: (0, k)),             # w1 chunk
            pl.BlockSpec((1, th), lambda i, k: (0, k)),         # b1 chunk
            wspec((th, out_f), lambda i, k: (k, 0)),            # w2 chunk
            pl.BlockSpec((1, out_f), lambda i, k: (0, 0)),      # b2
        ]
        return pl.pallas_call(
            kernel,
            out_shape=jax.ShapeDtypeStruct((n_eff, out_f), out_dtype),
            grid_spec=pltpu.PrefetchScalarGridSpec(
                num_scalar_prefetch=0,
                grid=grid,
                in_specs=in_specs,
                out_specs=pl.BlockSpec((tm_eff, out_f), lambda i, k: (i, 0)),
                scratch_shapes=scratch_shapes,
            ),
            compiler_params=pltpu.CompilerParams(
                dimension_semantics=("parallel", "arbitrary"),
                vmem_limit_bytes=vmem_limit),
            cost_estimate=cost,
        )

    try:
        out = build(pipe_mode)(x, w1, b1_2d, w2, b2_2d)
    except Exception as e:
        # Narrow fallback: only retry (with default double-buffering) when the
        # failure is specifically about the pipeline_mode / Buffered feature.
        msg = str(e).lower()
        if pipe_mode is not None and any(
                s in msg for s in ("pipeline_mode", "buffered", "buffer_count",
                                   "unexpected keyword")):
            out = build(None)(x, w1, b1_2d, w2, b2_2d)
        else:
            raise

    return out[:n] if n_eff != n else out


def mlp_reference(x, w1, b1, w2, b2):
    h = x @ w1 + b1
    h = 0.5 * h * (1.0 + lax.erf(h * _INV_SQRT2))
    return h @ w2 + b2


if __name__ == "__main__":
    # Small shapes consistent with the module: batch=2, seq=8, in=32, hidden=64.
    batch, seq = 2, 8
    in_features, hidden_features, out_features = 32, 64, 32

    key = jax.random.PRNGKey(0)
    kx, k1, kb1, k2, kb2 = jax.random.split(key, 5)

    x = jax.random.normal(kx, (batch, seq, in_features), dtype=jnp.float32)

    # torch Linear stores weight as (out, in); we keep the transposed (in, out)
    # layout so the kernel computes x @ W.
    bound1 = 1.0 / math.sqrt(in_features)
    w1 = jax.random.uniform(k1, (in_features, hidden_features),
                            minval=-bound1, maxval=bound1, dtype=jnp.float32)
    b1 = jax.random.uniform(kb1, (hidden_features,),
                            minval=-bound1, maxval=bound1, dtype=jnp.float32)
    bound2 = 1.0 / math.sqrt(hidden_features)
    w2 = jax.random.uniform(k2, (hidden_features, out_features),
                            minval=-bound2, maxval=bound2, dtype=jnp.float32)
    b2 = jax.random.uniform(kb2, (out_features,),
                            minval=-bound2, maxval=bound2, dtype=jnp.float32)

    x_flat = x.reshape(batch * seq, in_features)
    ref = mlp_reference(x_flat, w1, b1, w2, b2).reshape(batch, seq, out_features)

    # f32 path: matches torch's exact-erf GELU numerics.
    out_flat = mlp_pallas(x_flat, w1, b1, w2, b2)
    out = out_flat.reshape(batch, seq, out_features)
    jax.block_until_ready(out)
    assert jnp.allclose(out, ref, atol=1e-5, rtol=1e-5), "f32 mismatch vs reference"

    # bf16-matmul / f32-accumulate perf path (looser tolerance).
    out_bf16 = mlp_pallas(x_flat, w1, b1, w2, b2, compute_dtype=jnp.bfloat16)
    out_bf16 = out_bf16.reshape(batch, seq, out_features)
    jax.block_until_ready(out_bf16)
    assert jnp.allclose(out_bf16, ref, atol=2e-1, rtol=5e-2), "bf16 mismatch vs reference"

    print("KERNEL_OK")
</pallas_src>

<mosaic_0001>
module attributes {stable_mosaic.version = 11 : i64} {
  func.func @kernel(%arg0: i32, %arg1: i32, %arg2: memref<8x32xf32, #tpu.memory_space<vmem>>, %arg3: memref<32x64xf32, #tpu.memory_space<vmem>>, %arg4: memref<1x64xf32, #tpu.memory_space<vmem>>, %arg5: memref<64x32xf32, #tpu.memory_space<vmem>>, %arg6: memref<1x32xf32, #tpu.memory_space<vmem>>, %arg7: memref<8x32xf32, #tpu.memory_space<vmem>>) attributes {dimension_semantics = [#tpu.dimension_semantics<parallel>, #tpu.dimension_semantics<arbitrary>], iteration_bounds = array<i64: 2, 1>, scalar_prefetch = 0 : i64, scratch_operands = 0 : i64, tpu.core_type = #tpu.core_type<tc>, window_params = [{transform_indices = @transform_0, window_bounds = array<i64: 8, 32>}, {pipeline_mode = #tpu.pipeline_mode<synchronous>, transform_indices = @transform_1, window_bounds = array<i64: 32, 64>}, {transform_indices = @transform_2, window_bounds = array<i64: 1, 64>}, {pipeline_mode = #tpu.pipeline_mode<synchronous>, transform_indices = @transform_3, window_bounds = array<i64: 64, 32>}, {pipeline_mode = #tpu.pipeline_mode<synchronous>, transform_indices = @transform_4, window_bounds = array<i64: 1, 32>}, {transform_indices = @transform_5, window_bounds = array<i64: 8, 32>}]} {
    %c0 = arith.constant 0 : index
    %c0_0 = arith.constant 0 : index
    %0 = vector.load %arg2[%c0, %c0_0] : memref<8x32xf32, #tpu.memory_space<vmem>>, vector<8x32xf32>
    %cst = arith.constant 0.000000e+00 : f32
    %1 = vector.broadcast %cst : f32 to vector<8x32xf32>
    %c0_1 = arith.constant 0 : index
    %c0_2 = arith.constant 0 : index
    %2 = vector.load %arg3[%c0_1, %c0_2] : memref<32x64xf32, #tpu.memory_space<vmem>>, vector<32x64xf32>
    %cst_3 = arith.constant dense<0.000000e+00> : vector<8x64xf32>
    %3 = tpu.matmul %0, %2, %cst_3 {dimension_numbers = #tpu.dot_dimension_numbers<[1], [0], [0], [1], [0, 0, 1, 1], [], []>} : vector<8x32xf32>, vector<32x64xf32>, vector<8x64xf32> -> vector<8x64xf32>
    %c0_4 = arith.constant 0 : index
    %c0_5 = arith.constant 0 : index
    %4 = vector.load %arg4[%c0_4, %c0_5] : memref<1x64xf32, #tpu.memory_space<vmem>>, vector<1x64xf32>
    %5 = vector.broadcast %4 : vector<1x64xf32> to vector<8x64xf32>
    %6 = arith.addf %3, %5 : vector<8x64xf32>
    %cst_6 = arith.constant 5.000000e-01 : f32
    %7 = vector.broadcast %cst_6 : f32 to vector<8x64xf32>
    %8 = arith.mulf %7, %6 : vector<8x64xf32>
    %cst_7 = arith.constant 0.707106769 : f32
    %9 = vector.broadcast %cst_7 : f32 to vector<8x64xf32>
    %10 = arith.mulf %6, %9 : vector<8x64xf32>
    %11 = math.erf %10 : vector<8x64xf32>
    %cst_8 = arith.constant 1.000000e+00 : f32
    %12 = vector.broadcast %cst_8 : f32 to vector<8x64xf32>
    %13 = arith.addf %12, %11 : vector<8x64xf32>
    %14 = arith.mulf %8, %13 : vector<8x64xf32>
    %c0_9 = arith.constant 0 : index
    %c0_10 = arith.constant 0 : index
    %15 = vector.load %arg5[%c0_9, %c0_10] : memref<64x32xf32, #tpu.memory_space<vmem>>, vector<64x32xf32>
    %cst_11 = arith.constant dense<0.000000e+00> : vector<8x32xf32>
    %16 = tpu.matmul %14, %15, %cst_11 {dimension_numbers = #tpu.dot_dimension_numbers<[1], [0], [0], [1], [0, 0, 1, 1], [], []>} : vector<8x64xf32>, vector<64x32xf32>, vector<8x32xf32> -> vector<8x32xf32>
    %17 = arith.addf %1, %16 : vector<8x32xf32>
    %c0_12 = arith.constant 0 : index
    %c0_13 = arith.constant 0 : index
    %18 = vector.load %arg6[%c0_12, %c0_13] : memref<1x32xf32, #tpu.memory_space<vmem>>, vector<1x32xf32>
    %19 = vector.broadcast %18 : vector<1x32xf32> to vector<8x32xf32>
    %20 = arith.addf %17, %19 : vector<8x32xf32>
    %c0_14 = arith.constant 0 : index
    %c0_15 = arith.constant 0 : index
    %21 = vector.load %arg7[%c0_14, %c0_15] : memref<8x32xf32, #tpu.memory_space<vmem>>, vector<8x32xf32>
    tpu.vector_store %arg7[%c0_14, %c0_15], %20 {strides = array<i32>} : memref<8x32xf32, #tpu.memory_space<vmem>>, vector<8x32xf32>,
    return
  }
  func.func @transform_0(%arg0: i32, %arg1: i32) -> (i32, i32) {
    %c0_i32 = arith.constant 0 : i32
    %c0_i32_0 = arith.constant 0 : i32
    return %arg0, %c0_i32 : i32, i32
  }
  func.func @transform_1(%arg0: i32, %arg1: i32) -> (i32, i32) {
    %c0_i32 = arith.constant 0 : i32
    %c0_i32_0 = arith.constant 0 : i32
    return %c0_i32, %arg1 : i32, i32
  }
  func.func @transform_2(%arg0: i32, %arg1: i32) -> (i32, i32) {
    %c0_i32 = arith.constant 0 : i32
    %c0_i32_0 = arith.constant 0 : i32
    return %c0_i32, %arg1 : i32, i32
  }
  func.func @transform_3(%arg0: i32, %arg1: i32) -> (i32, i32) {
    %c0_i32 = arith.constant 0 : i32
    %c0_i32_0 = arith.constant 0 : i32
    return %arg1, %c0_i32 : i32, i32
  }
  func.func @transform_4(%arg0: i32, %arg1: i32) -> (i32, i32) {
    %c0_i32 = arith.constant 0 : i32
    %c0_i32_0 = arith.constant 0 : i32
    %c0_i32_1 = arith.constant 0 : i32
    return %c0_i32, %c0_i32_0 : i32, i32
  }
  func.func @transform_5(%arg0: i32, %arg1: i32) -> (i32, i32) {
    %c0_i32 = arith.constant 0 : i32
    %c0_i32_0 = arith.constant 0 : i32
    return %arg0, %c0_i32 : i32, i32
  }
}

</mosaic_0001>

<bundles_post_ra>
// kernel: tpu_custom_call.1
= control target key start
LH: loop header
LB: loop body
LE: loop exit
PB: predicated region body
PF: predicated region fallthrough
CT: control target
= control target key end

     0   :  { %10 = vsyncpa [#allocation3], 0  ;;  %s970_s0 = inlined_call_operand.vmem [shape: f32[16,32], index: 0, kind: input, shape index: {}]   ;;  %s971_s1 = inlined_call_operand.vmem [shape: f32[32,64], index: 1, kind: input, shape index: {}]   ;;  %s972_s2 = inlined_call_operand.vmem [shape: f32[1,64], index: 2, kind: input, shape index: {}]   ;;  %s973_s3 = inlined_call_operand.vmem [shape: f32[64,32], index: 3, kind: input, shape index: {}]   ;;  %s974_s4 = inlined_call_operand.vmem [shape: f32[1,32], index: 4, kind: input, shape index: {}]   ;;  %s975_s5 = inlined_call_operand.hbm [shape: f32[16,32], index: 5, kind: output, shape index: {}]  }
   0x1   :  { %12 = vsyncpa [#allocation3 + $0x1], 0  ;;  %s821_s18 = smov 0   ;;  %s823_s19 = smov 0  }
   0x2   :  { %s825_s20 = smov 0   ;;  %s827_s21 = smov 0  }
   0x3   :  { %s829_s22 = smov 0   ;;  %s831_s23 = smov 0  }
   0x4 LB: > { %s589_s24 = sadd.s32 4294967295, %s786_s23   ;;  %s590_s25 = sadd.s32 4294967294, %s786_s23   ;;  %s786_s23 = sphi %s831_s23, %s18_s23   ;;  %s782_s22 = sphi %s829_s22, %s982_s22   ;;  %s778_s21 = sphi %s827_s21, %s981_s21   ;;  %s774_s20 = sphi %s825_s20, %s980_s20   ;;  %s770_s19 = sphi %s823_s19, %s979_s19   ;;  %s766_s18 = sphi %s821_s18, %s978_s18  }
   0x5   : > { %s30_s26 = sadd.s32 1, %s782_s22  ;;  %s162_s27 = sadd.s32 1, %s774_s20 }
   0x6   : > { %p32_p0 = scmp.ge.s32.totalorder %s30_s26, 2  ;;  %p172_p1 = scmp.ne.s32.totalorder %s774_s20, %s770_s19 }
   0x7   : > { %p173_p2 = scmp.eq.s32.totalorder %s589_s24, 1  ;;  %p178_p3 = scmp.ne.s32.totalorder %s770_s19, %s766_s18 }
   0x8   : > { %s984_s26 = smov (%p32_p0, %s30_s26), 0  ;;  %p179_p5 = scmp.eq.s32.totalorder %s590_s25, 1 }
   0x9   : > { %p861_p4 = por %p173_p2, %p172_p1  ;;  %s159_s29 = ssub.s32 %s782_s22, %s984_s26 }
   0xa   : > { %p596_p6 = scmp.ge.s32.totalorder %s786_s23, 1  ;;  %p160_p7 = scmp.eq.s32.totalorder %s159_s29, 0 }
   0xb   : > { %p868_p8 = por %p179_p5, %p178_p3  ;;  %p229_p9 = scmp.lt.s32.totalorder %s786_s23, 3 }
   0xc   : > { %s874_s6 = scalar_select %p160_p7, %s774_s20, %s162_s27  }
   0xd   : > { %p230_p10 = pnand %p596_p6, %p229_p9 }
   0xe   : > { %p268_p11 = scmp.lt.s32.totalorder (!%p230_p10), %s778_s21, 1  ;;  %s265_s8 = sand.u32 (!%p230_p10), 1, %s770_s19  }
   0xf   : > { %233 = sbr.rel (%p230_p10) target bundleno = 452 (0x1c4), region = 40  ;;  %s597_s9 = sshll.u32 (!%p230_p10), %s265_s8, 3 }
  0x10   : > { %s604_s12 = sshll.u32 (!%p230_p10), %s778_s21, 7  ;;  %s267_s13 = scalar_lea.vmem (!%p230_p10), [#allocation2], %s597_s9 }
  0x11   : > { %s929_s17 = scalar_lea.hbm (!%p230_p10), %s975_s5, %s604_s12  ;;  %s467_s24 = scalar_lea.sflag (!%p230_p10), [#allocation3], %s265_s8 }
  0x14   : > { %v289_v0 = vld [vmem:[%s971_s1 + $0x18] sm:$0xff]  ;;  %v788_v1 = vmov 0.0   ;;  %v288_v2 = vld [vmem:[%s971_s1 + $0x10] sm:$0xff]  ;;  %vm789_vm0 = vmmov 0   ;;  %s269_s11 = scalar_select %p268_p11, %s778_s21, 1  ;;  %v287_v3 = vld [vmem:[%s971_s1 + $0x8] sm:$0xff] }
  0x15   : > { %621 = vmatprep.subr.mxu0 %v788_v1  ;;  %629 = vmatprep.mubr.msk.f32.mxu0 %vm789_vm0, %v788_v1  ;;  %v286_v4 = vld [vmem:[%s971_s1] sm:$0xff]  ;;  %vm297_vm1 = vcmask 261120   ;;  %v383_v6 = vld [vmem:[%s973_s3 + $0x38] sm:$0xff]  ;;  %v382_v7 = vld [vmem:[%s973_s3 + $0x30] sm:$0xff]  ;;  %vm391_vm2 = vcmask 523264   ;;  %s790_s21 = smov [#allocation2]  }
  0x16   : > { %622 = vmatpush3.msra.mxu0 %v289_v0  ;;  %632 = vmatprep.subr.mxu1 %v788_v1  ;;  %s598_s14 = sshll.u32 %s269_s11, 3  ;;  %v381_v8 = vld [vmem:[%s973_s3 + $0x28] sm:$0xff]  ;;  %v380_v9 = vld [vmem:[%s973_s3 + $0x20] sm:$0xff]  ;;  %v379_v10 = vld [vmem:[%s973_s3 + $0x18] sm:$0xff]  ;;  %s714_s27 = sshll.u32 %s790_s21, 4  ;;  %s715_s27 = int_to_ptr.vmem [resolvable:$false] %s714_s27 }
  0x17   : > { %623 = vmatprep.subr.mxu0 %v788_v1  ;;  %648 = vmatprep.mubr.msk.f32.mxu1 %vm789_vm0, %v788_v1  ;;  %s271_s25 = scalar_lea.vmem %s970_s0, %s598_s14  ;;  %v378_v11 = vld [vmem:[%s973_s3 + $0x10] sm:$0xff]  ;;  %v377_v12 = vld [vmem:[%s973_s3 + $0x8] sm:$0xff]  ;;  %v376_v13 = vld [vmem:[%s973_s3] sm:$0xff]  ;;  %s480_s14 = sshll.u32 %s267_s13, 4  ;;  %s481_s14 = int_to_ptr.vmem [resolvable:$true] %s480_s14 }
  0x18   : > { %624 = vmatpush3.msra.mxu0 %v288_v2  ;;  %v285_v5 = vld [vmem:[%s271_s25] sm:$0xff]  ;;  %633 = vmatpush3.msra.mxu1 %v383_v6  ;;  %s710_s25 = scalar_lea.vmem %s481_s14, 128  ;;  %s716_s29 = scalar_lea.vmem %s715_s27, 256 }
  0x19   : > { %625 = vmatprep.subr.mxu0 %v788_v1  ;;  %634 = vmatprep.subr.mxu1 %v788_v1  ;;  %v599_v14 = vld [vmem:[%s972_s2] ss:$0 sm:$0xff]  ;;  %p711_p12 = scmp.ne.s32.totalorder %s481_s14, %s710_s25  ;;  %p717_p1 = scmp.lt.s32.totalorder %s481_s14, %s715_s27 }
  0x1a   : > { %626 = vmatpush3.msra.mxu0 %v287_v3  ;;  %635 = vmatpush3.msra.mxu1 %v382_v7  ;;  %v601_v23 = vld [vmem:[%s974_s4] ss:$0 sm:$0xff]  ;;  %p718_p2 = scmp.lt.s32.totalorder %s716_s29, %s710_s25 }
  0x1b   : > { %627 = vmatprep.subr.mxu0 %v788_v1  ;;  %636 = vmatprep.subr.mxu1 %v788_v1  ;;  %p712_p13 = pnand %p711_p12, %p861_p4 }
  0x1c   : > { %628 = vmatpush3.msra.mxu0 %v286_v4  ;;  %637 = vmatpush3.msra.mxu1 %v381_v8  ;;  %p719_p3 = por %p718_p2, %p717_p1 }
  0x1d   : > { %630 = vmatmul.mubr.msk.f32.vlgmr.msra.gmra.mxu0 %vm297_vm1, %v285_v5  ;;  %638 = vmatprep.subr.mxu1 %v788_v1  ;;  %p713_p0 = pneg %p712_p13 }
  0x1e   : > { %639 = vmatpush3.msra.mxu1 %v380_v9 }
  0x1f   : > { %640 = vmatprep.subr.mxu1 %v788_v1  ;;  %p720_p5 = pnand %p719_p3, %p713_p0 }
  0x20   : > { %641 = vmatpush3.msra.mxu1 %v379_v10 }
  0x21   : > { %642 = vmatprep.subr.mxu1 %v788_v1 }
  0x22   : > { %643 = vmatpush3.msra.mxu1 %v378_v11 }
  0x23   : > { %644 = vmatprep.subr.mxu1 %v788_v1 }
  0x24   : > { %645 = vmatpush3.msra.mxu1 %v377_v12 }
  0x25   : > { %646 = vmatprep.subr.mxu1 %v788_v1 }
  0x26   : > { %647 = vmatpush3.msra.mxu1 %v376_v13 }
  0xdd   : > { %v367_v15 = vpop.f32.mrf.mxu0 }
  0xde   : > { %v368_v16 = vadd.f32 %v599_v14, %v367_v15 }
  0xdf   : > { %v631_v17 = vpop.f32.mrf.mxu0 }
  0xe0   : > { %v372_v18 = vmul.f32 0.70710677, %v368_v16  ;;  %v371_v20 = vmul.f32 0.5, %v368_v16 }
  0xe2   : > { %708 = verf.f32 %v372_v18 }
  0xef   : > { %v709_v19 = vpop.eup %708 }
  0xf0   : > { %v374_v21 = vadd.f32 1.0, %v709_v19 }
  0xf2   : > { %v375_v22 = vmul.f32 %v374_v21, %v371_v20 }
  0xf4   : > { %649 = vmatmul.mubr.msk.f32.vlgmr.msra.gmra.mxu1 %vm391_vm2, %v375_v22 }
 0x1b4   : > { %v461_v24 = vpop.f32.mrf.mxu1 }
 0x1b5   : > { %v462_v25 = vadd.f32 %v601_v23, %v461_v24 }
 0x1b6   : > { %v650_v26 = vpop.f32.mrf.mxu1 }
 0x1b7   : > { %465 = vst.msk [vmem:[%s267_s13] sm:$0xff] %vm297_vm1, %v462_v25 }
 0x1b8   : > { %723 = shalt.err (!%p720_p5)
}
 0x1b9   : > { %s724_s7 = scalar_lea.hbm %s929_s17, 128  ;;  %s728_s10 = scalar_lea.hbm %s975_s5, 256 }
 0x1ba   : > { %p725_p6 = scmp.ne.s32.totalorder %s929_s17, %s724_s7  ;;  %p729_p10 = scmp.lt.s32.totalorder %s929_s17, %s975_s5 }
 0x1bb   : > { %p730_p11 = scmp.lt.s32.totalorder %s728_s10, %s724_s7 }
 0x1bc   : > { %p726_p7 = pnand %p725_p6, %p861_p4 }
 0x1bd   : > { %p731_p12 = por %p730_p11, %p729_p10 }
 0x1be   : > { %p727_p9 = pneg %p726_p7 }
 0x1c0   : > { %p732_p13 = pnand %p731_p12, %p727_p9 }
 0x1c2   : > { %735 = shalt.err (!%p732_p13)
}
 0x1c3   : > { %651 = dma.vmem_to_hbm [thread:$0]  (%p861_p4), %s481_s14, 128, %s929_s17, %s467_s24  }
 0x1c4 PF: > { %p657_p0 = scmp.ge.s32.totalorder %s786_s23, 2  ;;  %s492_s13 = sand.u32 1, %s766_s18  }
 0x1c5   : > { %s493_s15 = scalar_lea.sflag [#allocation3], %s492_s13 }
 0x1c6   : > { %p654_p1 = pnand %p657_p0, %p868_p8 }
 0x1c8   : > { %p655_p2 = pneg %p654_p1 }
 0x1ca   : > { %761 = dma.done.wait (%p655_p2), %s493_s15, 128  }
 0x1cb   : > { %763 = vsyncadd (%p655_p2), %s493_s15, 4294967168  ;;  %s18_s23 = sadd.s32 1, %s786_s23   ;;  %s978_s18 = smov %s770_s19 }
 0x1cc   : > { %p15_p3 = scmp.ge.s32.totalorder %s18_s23, 4   ;;  %s979_s19 = smov %s774_s20 }
 0x1cd   : > { %s980_s20 = smov %s874_s6  ;;  %s981_s21 = smov %s782_s22 }
 0x1ce   : > { %s982_s22 = smov %s984_s26  ;;  %17 = sbr.rel (!%p15_p3) target bundleno = 4 (0x4), region = 84 }
 0x1d3   :  { %498 = vsyncpa [#allocation3], 1 }
 0x1d4   :  { %500 = vsyncpa [#allocation3 + $0x1], 1 }

</bundles_post_ra>
